<compile_context>
chip_gen: v7x
topology: tpu7x:2x2x1
jax: 0.10.0
libtpu: 0.0.40
codegen_flags: <defaults>
</compile_context>

<pallas_src>
import jax
import jax.numpy as jnp
from jax.experimental import pallas as pl
from jax.experimental.pallas import tpu as pltpu

NEG_SLOPE = 0.01  # torch.nn.LeakyReLU default
LANE = 128


def _leaky_relu(x):
    # Valid for 0 < slope < 1: mul+max (2 VALU ops) instead of cmp+select+mul.
    return jnp.maximum(x, NEG_SLOPE * x)


def _round_up(n, m):
    return ((n + m - 1) // m) * m


def _cdiv(a, b):
    return (a + b - 1) // b


def mlp_kernel(x_ref,
               w1_ref, b1_ref,
               w2_ref, b2_ref,
               w3_ref, b3_ref,
               w4_ref, b4_ref,
               w5_ref, b5_ref,
               o_ref):
    """One batch tile per grid step. Matmuls accumulate in f32 on the MXU;
    bias add + LeakyReLU run in the compute dtype on the VPU."""
    cdt = w1_ref.dtype
    h = x_ref[...]
    for w_ref, b_ref in ((w1_ref, b1_ref), (w2_ref, b2_ref),
                         (w3_ref, b3_ref), (w4_ref, b4_ref)):
        acc = jnp.dot(h, w_ref[...], preferred_element_type=jnp.float32)
        h = _leaky_relu(acc.astype(cdt) + b_ref[...])
    acc = jnp.dot(h, w5_ref[...], preferred_element_type=jnp.float32)
    o_ref[...] = (acc.astype(cdt) + b5_ref[...]).astype(o_ref.dtype)


def pad_params(params, compute_dtype=jnp.bfloat16):
    """Zero-pad every layer's output dim to a multiple of 128 lanes and cast to
    the compute dtype. Call ONCE and reuse (padding is hoisted out of the
    per-forward path).

    Padded columns carry zero weights + zero bias, so padded activations are
    LeakyReLU(0) = 0 and contribute nothing downstream.
    """
    padded = []
    prev_out_pad = None
    for i, (w, b) in enumerate(params):
        fi, fo = w.shape
        fi_p = fi if i == 0 else prev_out_pad
        fo_p = _round_up(fo, LANE)
        wp = jnp.zeros((fi_p, fo_p), compute_dtype).at[:fi, :fo].set(
            w.astype(compute_dtype))
        bp = jnp.zeros((1, fo_p), compute_dtype).at[:, :fo].set(
            b.astype(compute_dtype))
        padded.append((wp, bp))
        prev_out_pad = fo_p
    return padded


def _choose_tb(B, tb_cap):
    """Padding-aware batch tile: minimize zero rows, and when B is large
    enough force >=2 grid steps so both v7x TensorCores get work."""
    n_tiles = _cdiv(B, max(tb_cap, 8))
    if B > 16:
        n_tiles = max(n_tiles, 2)
    return _round_up(_cdiv(B, n_tiles), 8)


def net_forward(x, padded_params, *, d_out, tb=1024):
    """x: (B, D_in) f32/bf16; padded_params: output of pad_params(); d_out: true
    output width. Returns (B, d_out) float32."""
    B, d_in = x.shape
    compute_dtype = padded_params[0][0].dtype
    d_out_pad = padded_params[-1][0].shape[1]

    TB = _choose_tb(B, tb)
    Bp = _round_up(B, TB)
    xp = x.astype(compute_dtype)
    if Bp != B:
        xp = jnp.pad(xp, ((0, Bp - B), (0, 0)))

    flat = [xp]
    in_specs = [pl.BlockSpec((TB, d_in), lambda i: (i, 0))]
    for (w, b) in padded_params:
        flat.extend([w, b])
        # Constant index_map -> same block every grid step -> weights and
        # biases stay resident in VMEM (single DMA).
        in_specs.append(pl.BlockSpec(w.shape, lambda i: (0, 0)))
        in_specs.append(pl.BlockSpec(b.shape, lambda i: (0, 0)))

    itemsize = jnp.dtype(compute_dtype).itemsize
    weight_bytes = sum(w.size * w.dtype.itemsize + b.size * b.dtype.itemsize
                       for w, b in padded_params)
    max_width = max(w.shape[1] for w, _ in padded_params)

    # Explicit VMEM budget: double-buffered x/out tiles + (double-buffered)
    # weights + f32 accumulator temporaries + headroom. Clamped to v7x's 64 MiB.
    vmem_budget = (2 * (TB * d_in + TB * d_out_pad) * itemsize
                   + 2 * weight_bytes
                   + 4 * TB * max_width * 4
                   + (4 << 20))
    vmem_budget = int(min(max(vmem_budget, 16 << 20), 64 << 20))

    flops = 2 * Bp * sum(w.shape[0] * w.shape[1] for w, _ in padded_params)
    bytes_accessed = (xp.size * itemsize + weight_bytes
                      + Bp * d_out_pad * itemsize)

    out = pl.pallas_call(
        mlp_kernel,
        out_shape=jax.ShapeDtypeStruct((Bp, d_out_pad), compute_dtype),
        grid=(Bp // TB,),
        in_specs=in_specs,
        out_specs=pl.BlockSpec((TB, d_out_pad), lambda i: (i, 0)),
        compiler_params=pltpu.CompilerParams(
            dimension_semantics=("parallel",),
            vmem_limit_bytes=vmem_budget),
        cost_estimate=pl.CostEstimate(
            flops=flops, transcendentals=0, bytes_accessed=bytes_accessed),
    )(*flat)

    # Slice off batch + lane padding outside the kernel; return f32 like the
    # PyTorch module.
    return out[:B, :d_out].astype(jnp.float32)


def init_params(key, d_in, d_out):
    """Deterministic init mirroring nn.Linear's U(-1/sqrt(fan_in), 1/sqrt(fan_in))."""
    dims = [d_in, 50, 200, 200, 50, d_out]
    params = []
    for i in range(len(dims) - 1):
        fan_in, fan_out = dims[i], dims[i + 1]
        key, kw, kb = jax.random.split(key, 3)
        bound = 1.0 / jnp.sqrt(jnp.float32(fan_in))
        w = jax.random.uniform(kw, (fan_in, fan_out), jnp.float32, -bound, bound)
        b = jax.random.uniform(kb, (1, fan_out), jnp.float32, -bound, bound)
        params.append((w, b))
    return params


def reference_forward(x, params, compute_dtype=jnp.float32):
    """Pure-JAX reference mirroring the kernel math (operands + epilogue in
    compute_dtype, f32 matmul accumulation)."""
    h = x.astype(compute_dtype)
    for i, (w, b) in enumerate(params):
        acc = jnp.dot(h, w.astype(compute_dtype),
                      preferred_element_type=jnp.float32)
        h = acc.astype(compute_dtype) + b.astype(compute_dtype)
        if i < len(params) - 1:
            h = _leaky_relu(h)
    return h.astype(jnp.float32)


if __name__ == "__main__":
    key = jax.random.PRNGKey(0)
    k_in, k_p, k_big = jax.random.split(key, 3)

    B, D_IN, D_OUT = 8, 32, 8
    x = jax.random.normal(k_in, (B, D_IN), jnp.float32)
    params = init_params(k_p, D_IN, D_OUT)

    # --- f32 check (tight tolerance vs. the PyTorch-equivalent forward) ---
    padded_f32 = pad_params(params, jnp.float32)      # pad/cast once, reuse
    out = jax.block_until_ready(net_forward(x, padded_f32, d_out=D_OUT))
    ref = reference_forward(x, params, jnp.float32)
    assert out.shape == (B, D_OUT)
    assert jnp.allclose(out, ref, atol=1e-4, rtol=1e-4), "f32 mismatch vs reference"

    # --- bf16 default path: batch-tiled grid (>=2 steps), bf16 operands +
    # epilogue, f32 MXU accumulation ---
    padded_bf16 = pad_params(params, jnp.bfloat16)    # pad/cast once, reuse
    xb = jax.random.normal(k_big, (500, D_IN), jnp.float32)
    out_b = jax.block_until_ready(net_forward(xb, padded_bf16, d_out=D_OUT))
    ref_b = reference_forward(xb, params, jnp.bfloat16)
    assert out_b.shape == (500, D_OUT)
    assert jnp.allclose(out_b, ref_b, atol=2e-2, rtol=2e-2), "bf16 mismatch vs reference"

    print("KERNEL_OK")
</pallas_src>

<mosaic_0001>
module attributes {stable_mosaic.version = 11 : i64} {
  func.func @mlp_kernel(%arg0: i32, %arg1: memref<8x32xf32, #tpu.memory_space<vmem>>, %arg2: memref<32x128xf32, #tpu.memory_space<vmem>>, %arg3: memref<1x128xf32, #tpu.memory_space<vmem>>, %arg4: memref<128x256xf32, #tpu.memory_space<vmem>>, %arg5: memref<1x256xf32, #tpu.memory_space<vmem>>, %arg6: memref<256x256xf32, #tpu.memory_space<vmem>>, %arg7: memref<1x256xf32, #tpu.memory_space<vmem>>, %arg8: memref<256x128xf32, #tpu.memory_space<vmem>>, %arg9: memref<1x128xf32, #tpu.memory_space<vmem>>, %arg10: memref<128x128xf32, #tpu.memory_space<vmem>>, %arg11: memref<1x128xf32, #tpu.memory_space<vmem>>, %arg12: memref<8x128xf32, #tpu.memory_space<vmem>>) attributes {dimension_semantics = [#tpu.dimension_semantics<parallel>], iteration_bounds = array<i64: 1>, scalar_prefetch = 0 : i64, scratch_operands = 0 : i64, tpu.core_type = #tpu.core_type<tc>, window_params = [{transform_indices = @transform_0, window_bounds = array<i64: 8, 32>}, {pipeline_mode = #tpu.pipeline_mode<synchronous>, transform_indices = @transform_1, window_bounds = array<i64: 32, 128>}, {pipeline_mode = #tpu.pipeline_mode<synchronous>, transform_indices = @transform_2, window_bounds = array<i64: 1, 128>}, {pipeline_mode = #tpu.pipeline_mode<synchronous>, transform_indices = @transform_3, window_bounds = array<i64: 128, 256>}, {pipeline_mode = #tpu.pipeline_mode<synchronous>, transform_indices = @transform_4, window_bounds = array<i64: 1, 256>}, {pipeline_mode = #tpu.pipeline_mode<synchronous>, transform_indices = @transform_5, window_bounds = array<i64: 256, 256>}, {pipeline_mode = #tpu.pipeline_mode<synchronous>, transform_indices = @transform_6, window_bounds = array<i64: 1, 256>}, {pipeline_mode = #tpu.pipeline_mode<synchronous>, transform_indices = @transform_7, window_bounds = array<i64: 256, 128>}, {pipeline_mode = #tpu.pipeline_mode<synchronous>, transform_indices = @transform_8, window_bounds = array<i64: 1, 128>}, {pipeline_mode = #tpu.pipeline_mode<synchronous>, transform_indices = @transform_9, window_bounds = array<i64: 128, 128>}, {pipeline_mode = #tpu.pipeline_mode<synchronous>, transform_indices = @transform_10, window_bounds = array<i64: 1, 128>}, {transform_indices = @transform_11, window_bounds = array<i64: 8, 128>}]} {
    %c0 = arith.constant 0 : index
    %c0_0 = arith.constant 0 : index
    %0 = vector.load %arg1[%c0, %c0_0] : memref<8x32xf32, #tpu.memory_space<vmem>>, vector<8x32xf32>
    %c0_1 = arith.constant 0 : index
    %c0_2 = arith.constant 0 : index
    %1 = vector.load %arg2[%c0_1, %c0_2] : memref<32x128xf32, #tpu.memory_space<vmem>>, vector<32x128xf32>
    %cst = arith.constant dense<0.000000e+00> : vector<8x128xf32>
    %2 = tpu.matmul %0, %1, %cst {dimension_numbers = #tpu.dot_dimension_numbers<[1], [0], [0], [1], [0, 0, 1, 1], [], []>} : vector<8x32xf32>, vector<32x128xf32>, vector<8x128xf32> -> vector<8x128xf32>
    %c0_3 = arith.constant 0 : index
    %c0_4 = arith.constant 0 : index
    %3 = vector.load %arg3[%c0_3, %c0_4] : memref<1x128xf32, #tpu.memory_space<vmem>>, vector<1x128xf32>
    %4 = vector.broadcast %3 : vector<1x128xf32> to vector<8x128xf32>
    %5 = arith.addf %2, %4 : vector<8x128xf32>
    %cst_5 = arith.constant 0.00999999977 : f32
    %6 = vector.broadcast %cst_5 : f32 to vector<8x128xf32>
    %7 = arith.mulf %6, %5 : vector<8x128xf32>
    %8 = arith.maximumf %5, %7 : vector<8x128xf32>
    %c0_6 = arith.constant 0 : index
    %c0_7 = arith.constant 0 : index
    %9 = vector.load %arg4[%c0_6, %c0_7] : memref<128x256xf32, #tpu.memory_space<vmem>>, vector<128x256xf32>
    %cst_8 = arith.constant dense<0.000000e+00> : vector<8x256xf32>
    %10 = tpu.matmul %8, %9, %cst_8 {dimension_numbers = #tpu.dot_dimension_numbers<[1], [0], [0], [1], [0, 0, 1, 1], [], []>} : vector<8x128xf32>, vector<128x256xf32>, vector<8x256xf32> -> vector<8x256xf32>
    %c0_9 = arith.constant 0 : index
    %c0_10 = arith.constant 0 : index
    %11 = vector.load %arg5[%c0_9, %c0_10] : memref<1x256xf32, #tpu.memory_space<vmem>>, vector<1x256xf32>
    %12 = vector.broadcast %11 : vector<1x256xf32> to vector<8x256xf32>
    %13 = arith.addf %10, %12 : vector<8x256xf32>
    %cst_11 = arith.constant 0.00999999977 : f32
    %14 = vector.broadcast %cst_11 : f32 to vector<8x256xf32>
    %15 = arith.mulf %14, %13 : vector<8x256xf32>
    %16 = arith.maximumf %13, %15 : vector<8x256xf32>
    %c0_12 = arith.constant 0 : index
    %c0_13 = arith.constant 0 : index
    %17 = vector.load %arg6[%c0_12, %c0_13] : memref<256x256xf32, #tpu.memory_space<vmem>>, vector<256x256xf32>
    %cst_14 = arith.constant dense<0.000000e+00> : vector<8x256xf32>
    %18 = tpu.matmul %16, %17, %cst_14 {dimension_numbers = #tpu.dot_dimension_numbers<[1], [0], [0], [1], [0, 0, 1, 1], [], []>} : vector<8x256xf32>, vector<256x256xf32>, vector<8x256xf32> -> vector<8x256xf32>
    %c0_15 = arith.constant 0 : index
    %c0_16 = arith.constant 0 : index
    %19 = vector.load %arg7[%c0_15, %c0_16] : memref<1x256xf32, #tpu.memory_space<vmem>>, vector<1x256xf32>
    %20 = vector.broadcast %19 : vector<1x256xf32> to vector<8x256xf32>
    %21 = arith.addf %18, %20 : vector<8x256xf32>
    %cst_17 = arith.constant 0.00999999977 : f32
    %22 = vector.broadcast %cst_17 : f32 to vector<8x256xf32>
    %23 = arith.mulf %22, %21 : vector<8x256xf32>
    %24 = arith.maximumf %21, %23 : vector<8x256xf32>
    %c0_18 = arith.constant 0 : index
    %c0_19 = arith.constant 0 : index
    %25 = vector.load %arg8[%c0_18, %c0_19] : memref<256x128xf32, #tpu.memory_space<vmem>>, vector<256x128xf32>
    %cst_20 = arith.constant dense<0.000000e+00> : vector<8x128xf32>
    %26 = tpu.matmul %24, %25, %cst_20 {dimension_numbers = #tpu.dot_dimension_numbers<[1], [0], [0], [1], [0, 0, 1, 1], [], []>} : vector<8x256xf32>, vector<256x128xf32>, vector<8x128xf32> -> vector<8x128xf32>
    %c0_21 = arith.constant 0 : index
    %c0_22 = arith.constant 0 : index
    %27 = vector.load %arg9[%c0_21, %c0_22] : memref<1x128xf32, #tpu.memory_space<vmem>>, vector<1x128xf32>
    %28 = vector.broadcast %27 : vector<1x128xf32> to vector<8x128xf32>
    %29 = arith.addf %26, %28 : vector<8x128xf32>
    %cst_23 = arith.constant 0.00999999977 : f32
    %30 = vector.broadcast %cst_23 : f32 to vector<8x128xf32>
    %31 = arith.mulf %30, %29 : vector<8x128xf32>
    %32 = arith.maximumf %29, %31 : vector<8x128xf32>
    %c0_24 = arith.constant 0 : index
    %c0_25 = arith.constant 0 : index
    %33 = vector.load %arg10[%c0_24, %c0_25] : memref<128x128xf32, #tpu.memory_space<vmem>>, vector<128x128xf32>
    %cst_26 = arith.constant dense<0.000000e+00> : vector<8x128xf32>
    %34 = tpu.matmul %32, %33, %cst_26 {dimension_numbers = #tpu.dot_dimension_numbers<[1], [0], [0], [1], [0, 0, 1, 1], [], []>} : vector<8x128xf32>, vector<128x128xf32>, vector<8x128xf32> -> vector<8x128xf32>
    %c0_27 = arith.constant 0 : index
    %c0_28 = arith.constant 0 : index
    %35 = vector.load %arg11[%c0_27, %c0_28] : memref<1x128xf32, #tpu.memory_space<vmem>>, vector<1x128xf32>
    %36 = vector.broadcast %35 : vector<1x128xf32> to vector<8x128xf32>
    %37 = arith.addf %34, %36 : vector<8x128xf32>
    %c0_29 = arith.constant 0 : index
    %c0_30 = arith.constant 0 : index
    %38 = vector.load %arg12[%c0_29, %c0_30] : memref<8x128xf32, #tpu.memory_space<vmem>>, vector<8x128xf32>
    tpu.vector_store %arg12[%c0_29, %c0_30], %37 {strides = array<i32>} : memref<8x128xf32, #tpu.memory_space<vmem>>, vector<8x128xf32>,
    return
  }
  func.func @transform_0(%arg0: i32) -> (i32, i32) {
    %c0_i32 = arith.constant 0 : i32
    %c0_i32_0 = arith.constant 0 : i32
    return %arg0, %c0_i32 : i32, i32
  }
  func.func @transform_1(%arg0: i32) -> (i32, i32) {
    %c0_i32 = arith.constant 0 : i32
    %c0_i32_0 = arith.constant 0 : i32
    %c0_i32_1 = arith.constant 0 : i32
    return %c0_i32, %c0_i32_0 : i32, i32
  }
  func.func @transform_2(%arg0: i32) -> (i32, i32) {
    %c0_i32 = arith.constant 0 : i32
    %c0_i32_0 = arith.constant 0 : i32
    %c0_i32_1 = arith.constant 0 : i32
    return %c0_i32, %c0_i32_0 : i32, i32
  }
  func.func @transform_3(%arg0: i32) -> (i32, i32) {
    %c0_i32 = arith.constant 0 : i32
    %c0_i32_0 = arith.constant 0 : i32
    %c0_i32_1 = arith.constant 0 : i32
    return %c0_i32, %c0_i32_0 : i32, i32
  }
  func.func @transform_4(%arg0: i32) -> (i32, i32) {
    %c0_i32 = arith.constant 0 : i32
    %c0_i32_0 = arith.constant 0 : i32
    %c0_i32_1 = arith.constant 0 : i32
    return %c0_i32, %c0_i32_0 : i32, i32
  }
  func.func @transform_5(%arg0: i32) -> (i32, i32) {
    %c0_i32 = arith.constant 0 : i32
    %c0_i32_0 = arith.constant 0 : i32
    %c0_i32_1 = arith.constant 0 : i32
    return %c0_i32, %c0_i32_0 : i32, i32
  }
  func.func @transform_6(%arg0: i32) -> (i32, i32) {
    %c0_i32 = arith.constant 0 : i32
    %c0_i32_0 = arith.constant 0 : i32
    %c0_i32_1 = arith.constant 0 : i32
    return %c0_i32, %c0_i32_0 : i32, i32
  }
  func.func @transform_7(%arg0: i32) -> (i32, i32) {
    %c0_i32 = arith.constant 0 : i32
    %c0_i32_0 = arith.constant 0 : i32
    %c0_i32_1 = arith.constant 0 : i32
    return %c0_i32, %c0_i32_0 : i32, i32
  }
  func.func @transform_8(%arg0: i32) -> (i32, i32) {
    %c0_i32 = arith.constant 0 : i32
    %c0_i32_0 = arith.constant 0 : i32
    %c0_i32_1 = arith.constant 0 : i32
    return %c0_i32, %c0_i32_0 : i32, i32
  }
  func.func @transform_9(%arg0: i32) -> (i32, i32) {
    %c0_i32 = arith.constant 0 : i32
    %c0_i32_0 = arith.constant 0 : i32
    %c0_i32_1 = arith.constant 0 : i32
    return %c0_i32, %c0_i32_0 : i32, i32
  }
  func.func @transform_10(%arg0: i32) -> (i32, i32) {
    %c0_i32 = arith.constant 0 : i32
    %c0_i32_0 = arith.constant 0 : i32
    %c0_i32_1 = arith.constant 0 : i32
    return %c0_i32, %c0_i32_0 : i32, i32
  }
  func.func @transform_11(%arg0: i32) -> (i32, i32) {
    %c0_i32 = arith.constant 0 : i32
    %c0_i32_0 = arith.constant 0 : i32
    return %arg0, %c0_i32 : i32, i32
  }
}

</mosaic_0001>

<bundles_post_ra>
// kernel: tpu_custom_call.1
= control target key start
LH: loop header
LB: loop body
LE: loop exit
PB: predicated region body
PF: predicated region fallthrough
CT: control target
= control target key end

     0   :  { %16 = vsyncpa [#allocation3], 0  ;;  %s1346_s0 = inlined_call_operand.hbm [shape: f32[8,32], index: 0, kind: input, shape index: {}]   ;;  %s1347_s1 = inlined_call_operand.hbm [shape: f32[32,128], index: 1, kind: input, shape index: {}]   ;;  %s1348_s2 = inlined_call_operand.vmem [shape: f32[1,128], index: 2, kind: input, shape index: {}]   ;;  %s1349_s3 = inlined_call_operand.hbm [shape: f32[128,256], index: 3, kind: input, shape index: {}]   ;;  %s1350_s4 = inlined_call_operand.vmem [shape: f32[1,256], index: 4, kind: input, shape index: {}]   ;;  %s1351_s5 = inlined_call_operand.hbm [shape: f32[256,256], index: 5, kind: input, shape index: {}]   ;;  %s1352_s6 = inlined_call_operand.vmem [shape: f32[1,256], index: 6, kind: input, shape index: {}]   ;;  %s1353_s7 = inlined_call_operand.hbm [shape: f32[256,128], index: 7, kind: input, shape index: {}]   ;;  %s1354_s8 = inlined_call_operand.vmem [shape: f32[1,128], index: 8, kind: input, shape index: {}]   ;;  %s1355_s9 = inlined_call_operand.hbm [shape: f32[128,128], index: 9, kind: input, shape index: {}]   ;;  %s1356_s10 = inlined_call_operand.vmem [shape: f32[1,128], index: 10, kind: input, shape index: {}]   ;;  %s1357_s11 = inlined_call_operand.hbm [shape: f32[8,128], index: 11, kind: output, shape index: {}]  }
   0x1   :  { %17 = vsyncpa [#allocation6], 0 }
   0x2   :  { %18 = vsyncpa [#allocation9], 0 }
   0x3   :  { %19 = vsyncpa [#allocation12], 0 }
   0x4   :  { %20 = vsyncpa [#allocation4], 0  ;;  %s1143_s17 = smov [#allocation5]   ;;  %s979_s21 = scalar_lea.hbm %s1347_s1, 512 }
   0x5   :  { %s36_s18 = sshll.u32 %s1143_s17, 4  ;;  %p980_p0 = scmp.ne.s32.totalorder %s1347_s1, %s979_s21  ;;  %s37_s18 = int_to_ptr.vmem [resolvable:$true] %s36_s18 }
   0x6   :  { %p983_p1 = scmp.lt.u32.totalorder %s979_s21, %s1347_s1 }
   0x8   :  { %p985_p2 = pnand %p983_p1, %p980_p0 }
   0xa   :  { %988 = shalt.err (!%p985_p2)
}
   0xb   :  { %s989_s26 = scalar_lea.vmem %s37_s18, 512  ;;  %p994_p4 = scmp.lt.s32.totalorder %s37_s18, %s37_s18 }
   0xc   :  { %p990_p3 = scmp.ne.s32.totalorder %s37_s18, %s989_s26  ;;  %p995_p5 = scmp.lt.s32.totalorder %s989_s26, %s989_s26 }
   0xe   :  { %p996_p6 = por %p995_p5, %p994_p4 }
  0x10   :  { %p997_p7 = pnand %p996_p6, %p990_p3 }
  0x12   :  { %1000 = shalt.err (!%p997_p7)
}
  0x13   :  { %s1144_s27 = smov 128   ;;  %s1145_s28 = smov 8  }
  0x14   :  { %42 = dma.hbm_to_vmem [thread:$0]  %s1347_s1, 512, %s37_s18, [#allocation6], %s1144_s27, %s1144_s27, %s1145_s28  }
  0x15   :  { %s1146_s12 = smov [#allocation8]   ;;  %s1147_s14 = smov [#allocation2]  }
  0x16   :  { %s64_s13 = sshll.u32 %s1146_s12, 4  ;;  %s27_s15 = sshll.u32 %s1147_s14, 4  ;;  %s65_s13 = int_to_ptr.vmem [resolvable:$true] %s64_s13  ;;  %s28_s15 = int_to_ptr.vmem [resolvable:$true] %s27_s15 }
  0x17   :  { %s1001_s19 = scalar_lea.hbm %s1351_s5, 8192 }
  0x18   :  { %p1002_p8 = scmp.ne.s32.totalorder %s1351_s5, %s1001_s19  ;;  %p1005_p9 = scmp.lt.u32.totalorder %s1001_s19, %s1351_s5 }
  0x1a   :  { %p1007_p10 = pnand %p1005_p9, %p1002_p8 }
  0x1c   :  { %1010 = shalt.err (!%p1007_p10)
}
  0x1d   :  { %s1011_s1 = scalar_lea.vmem %s65_s13, 8192  ;;  %p1016_p12 = scmp.lt.s32.totalorder %s65_s13, %s65_s13 }
  0x1e   :  { %p1012_p11 = scmp.ne.s32.totalorder %s65_s13, %s1011_s1  ;;  %p1017_p13 = scmp.lt.s32.totalorder %s1011_s1, %s1011_s1 }
  0x20   :  { %p1018_p0 = por %p1017_p13, %p1016_p12 }
  0x22   :  { %p1019_p1 = pnand %p1018_p0, %p1012_p11 }
  0x24   :  { %1022 = shalt.err (!%p1019_p1)
}
  0x25   :  { %s1148_s18 = smov 256   ;;  %s1149_s24 = smov 16  }
  0x26   :  { %70 = dma.hbm_to_vmem [thread:$0]  %s1351_s5, 8192, %s65_s13, [#allocation9], %s1148_s18, %s1148_s18, %s1149_s24  }
  0x27   :  { %s1023_s12 = scalar_lea.hbm %s1346_s0, 128 }
  0x28   :  { %p1024_p2 = scmp.ne.s32.totalorder %s1346_s0, %s1023_s12  ;;  %p1027_p3 = scmp.lt.u32.totalorder %s1023_s12, %s1346_s0 }
  0x2a   :  { %p1029_p4 = pnand %p1027_p3, %p1024_p2 }
  0x2c   :  { %1032 = shalt.err (!%p1029_p4)
}
  0x2d   :  { %s1033_s20 = scalar_lea.vmem %s28_s15, 128  ;;  %p1038_p6 = scmp.lt.s32.totalorder %s28_s15, %s28_s15 }
  0x2e   :  { %p1034_p5 = scmp.ne.s32.totalorder %s28_s15, %s1033_s20  ;;  %p1039_p7 = scmp.lt.s32.totalorder %s1033_s20, %s1033_s20 }
  0x30   :  { %p1040_p8 = por %p1039_p7, %p1038_p6 }
  0x32   :  { %p1041_p9 = pnand %p1040_p8, %p1034_p5 }
  0x34   :  { %1044 = shalt.err (!%p1041_p9)
}
  0x35   :  { %30 = dma.hbm_to_vmem [thread:$0]  %s1346_s0, 128, %s28_s15, [#allocation3]  }
  0x36   :  { %s1150_s21 = smov [#allocation7]   ;;  %s1151_s23 = smov [#allocation10]  }
  0x37   :  { %s50_s22 = sshll.u32 %s1150_s21, 4  ;;  %s78_s1 = sshll.u32 %s1151_s23, 4  ;;  %s51_s22 = int_to_ptr.vmem [resolvable:$true] %s50_s22  ;;  %s79_s1 = int_to_ptr.vmem [resolvable:$true] %s78_s1 }
  0x38   :  { %s1045_s29 = scalar_lea.hbm %s1349_s3, 4096 }
  0x39   :  { %p1046_p10 = scmp.ne.s32.totalorder %s1349_s3, %s1045_s29  ;;  %p1049_p11 = scmp.lt.u32.totalorder %s1045_s29, %s1349_s3 }
  0x3b   :  { %p1051_p12 = pnand %p1049_p11, %p1046_p10 }
  0x3d   :  { %1054 = shalt.err (!%p1051_p12)
}
  0x3e   :  { %s1055_s0 = scalar_lea.vmem %s51_s22, 4096  ;;  %p1060_p0 = scmp.lt.s32.totalorder %s51_s22, %s51_s22 }
  0x3f   :  { %p1056_p13 = scmp.ne.s32.totalorder %s51_s22, %s1055_s0  ;;  %p1061_p1 = scmp.lt.s32.totalorder %s1055_s0, %s1055_s0 }
  0x41   :  { %p1062_p2 = por %p1061_p1, %p1060_p0 }
  0x43   :  { %p1063_p3 = pnand %p1062_p2, %p1056_p13 }
  0x45   :  { %1066 = shalt.err (!%p1063_p3)
}
  0x46   :  { %56 = dma.hbm_to_vmem [thread:$0]  %s1349_s3, 4096, %s51_s22, [#allocation6], %s1148_s18, %s1148_s18, %s1149_s24  }
  0x47   :  { %s1067_s5 = scalar_lea.hbm %s1353_s7, 4096 }
  0x48   :  { %p1068_p4 = scmp.ne.s32.totalorder %s1353_s7, %s1067_s5  ;;  %p1071_p5 = scmp.lt.u32.totalorder %s1067_s5, %s1353_s7 }
  0x4a   :  { %p1073_p6 = pnand %p1071_p5, %p1068_p4 }
  0x4c   :  { %1076 = shalt.err (!%p1073_p6)
}
  0x4d   :  { %s1077_s26 = scalar_lea.vmem %s79_s1, 4096  ;;  %p1082_p8 = scmp.lt.s32.totalorder %s79_s1, %s79_s1 }
  0x4e   :  { %p1078_p7 = scmp.ne.s32.totalorder %s79_s1, %s1077_s26  ;;  %p1083_p9 = scmp.lt.s32.totalorder %s1077_s26, %s1077_s26 }
  0x50   :  { %p1084_p10 = por %p1083_p9, %p1082_p8 }
  0x52   :  { %p1085_p11 = pnand %p1084_p10, %p1078_p7 }
  0x54   :  { %1088 = shalt.err (!%p1085_p11)
}
  0x55   :  { %84 = dma.hbm_to_vmem [thread:$0]  %s1353_s7, 4096, %s79_s1, [#allocation9], %s1144_s27, %s1144_s27, %s1145_s28  }
  0x56   :  { %s1152_s24 = smov [#allocation11]   ;;  %s1089_s12 = scalar_lea.hbm %s1355_s9, 2048 }
  0x57   :  { %s92_s22 = sshll.u32 %s1152_s24, 4  ;;  %p1090_p12 = scmp.ne.s32.totalorder %s1355_s9, %s1089_s12  ;;  %s93_s22 = int_to_ptr.vmem [resolvable:$true] %s92_s22 }
  0x58   :  { %p1093_p13 = scmp.lt.u32.totalorder %s1089_s12, %s1355_s9 }
  0x5a   :  { %p1095_p0 = pnand %p1093_p13, %p1090_p12 }
  0x5c   :  { %1098 = shalt.err (!%p1095_p0)
}
  0x5d   :  { %s1099_s17 = scalar_lea.vmem %s93_s22, 2048  ;;  %p1104_p2 = scmp.lt.s32.totalorder %s93_s22, %s93_s22 }
  0x5e   :  { %p1100_p1 = scmp.ne.s32.totalorder %s93_s22, %s1099_s17  ;;  %p1105_p3 = scmp.lt.s32.totalorder %s1099_s17, %s1099_s17 }
  0x60   :  { %p1106_p4 = por %p1105_p3, %p1104_p2 }
  0x62   :  { %p1107_p5 = pnand %p1106_p4, %p1100_p1 }
  0x64   :  { %1110 = shalt.err (!%p1107_p5)
}
  0x65   :  { %98 = dma.hbm_to_vmem [thread:$0]  %s1355_s9, 2048, %s93_s22, [#allocation12], %s1144_s27, %s1144_s27, %s1145_s28  }
  0x66   :  { %1133 = dma.done.wait [#allocation3], 128  }
  0x67   :  { %1134 = vsyncadd [#allocation3], 4294967168 }
  0x68   :  { %1135 = dma.done.wait [#allocation6], 4608  }
  0x69   :  { %1136 = vsyncadd [#allocation6], 4294962688 }
  0x6a   :  { %1137 = dma.done.wait [#allocation9], 12288  }
  0x6b   :  { %1138 = vsyncadd [#allocation9], 4294955008 }
  0x6c   :  { %1139 = dma.done.wait [#allocation12], 2048  }
  0x6d   :  { %1140 = vsyncadd [#allocation12], 4294965248  ;;  %v1153_v0 = vmov 0.0|0.0   ;;  %vm1154_vm0 = vmmov 0   ;;  %v1155_v1 = vmov 0.0   ;;  %v120_v2 = vld [vmem:[#allocation5] sm:$0xff] }
  0x6e   :  { %807 = vmatprep.subr.bf16.mxu0 %v1153_v0  ;;  %769 = vmatprep.mubr.msk.f32.mxu0 %vm1154_vm0, %v1155_v1  ;;  %v121_v3 = vld [vmem:[#allocation5 + $0x8] sm:$0xff]  ;;  %v122_v4 = vld [vmem:[#allocation5 + $0x10] sm:$0xff]  ;;  %v123_v6 = vld [vmem:[#allocation5 + $0x18] sm:$0xff]  ;;  %vm131_vm1 = vcmask 261120   ;;  %s1156_s21 = smov [#allocation13]  }
  0x6f   :  { %315 = vmatprep.mubr.f32.mxu1 %v1155_v1  ;;  %v808_v5 = vpack.c.bf16 %v121_v3, %v120_v2  ;;  %v208_v7 = vld [vmem:[#allocation7 + $0x8] sm:$0xff]  ;;  %v210_v8 = vld [vmem:[#allocation7 + $0x18] sm:$0xff]  ;;  %v207_v9 = vld [vmem:[#allocation7] sm:$0xff]  ;;  %v811_v11 = vpack.c.bf16 %v123_v6, %v122_v4  ;;  %s688_s23 = sshll.u32 %s1156_s21, 4  ;;  %s689_s23 = int_to_ptr.vmem [resolvable:$true] %s688_s23 }
  0x70   :  { %v209_v10 = vld [vmem:[#allocation7 + $0x10] sm:$0xff]  ;;  %v813_v12 = vpack.c.bf16 %v210_v8, %v208_v7  ;;  %v212_v14 = vld [vmem:[#allocation7 + $0x28] sm:$0xff]  ;;  %v214_v15 = vld [vmem:[#allocation7 + $0x38] sm:$0xff]  ;;  %s1111_s25 = scalar_lea.vmem %s689_s23, 128  ;;  %p1116_p7 = scmp.lt.s32.totalorder %s689_s23, %s689_s23 }
  0x71   :  { %809 = vmatpush3.bf16.msra.mxu0 %v808_v5  ;;  %v815_v13 = vpack.c.bf16 %v209_v10, %v207_v9  ;;  %v211_v16 = vld [vmem:[#allocation7 + $0x20] sm:$0xff]  ;;  %v817_v17 = vpack.c.bf16 %v214_v15, %v212_v14  ;;  %v213_v18 = vld [vmem:[#allocation7 + $0x30] sm:$0xff]  ;;  %v216_v19 = vld [vmem:[#allocation7 + $0x48] sm:$0xff]  ;;  %p1112_p6 = scmp.ne.s32.totalorder %s689_s23, %s1111_s25  ;;  %p1117_p8 = scmp.lt.s32.totalorder %s1111_s25, %s1111_s25 }
  0x72   :  { %810 = vmatprep.subr.bf16.mxu0 %v1153_v0  ;;  %v218_v20 = vld [vmem:[#allocation7 + $0x58] sm:$0xff]  ;;  %814 = vmatprep.subr.bf16.mxu1 %v813_v12  ;;  %v819_v21 = vpack.c.bf16 %v213_v18, %v211_v16  ;;  %v215_v24 = vld [vmem:[#allocation7 + $0x40] sm:$0xff]  ;;  %v217_v25 = vld [vmem:[#allocation7 + $0x50] sm:$0xff] }
  0x73   :  { %816 = vmatpush1.bf16.msra.mxu1 %v815_v13  ;;  %v119_v22 = vld [vmem:[#allocation2] sm:$0xff]  ;;  %v821_v23 = vpack.c.bf16 %v218_v20, %v216_v19  ;;  %v220_v26 = vld [vmem:[#allocation7 + $0x68] sm:$0xff]  ;;  %v823_v28 = vpack.c.bf16 %v217_v25, %v215_v24  ;;  %v219_v30 = vld [vmem:[#allocation7 + $0x60] sm:$0xff]  ;;  %p1118_p9 = por %p1117_p8, %p1116_p7 }
  0x74   :  { %818 = vmatprep.subr.bf16.mxu1 %v817_v17  ;;  %v222_v27 = vld [vmem:[#allocation7 + $0x78] sm:$0xff]  ;;  %v221_v31 = vld [vmem:[#allocation7 + $0x70] sm:$0xff]  ;;  %v224_v32 = vld [vmem:[#allocation7 + $0x88] sm:$0xff] }
  0x75   :  { %812 = vmatpush3.bf16.msra.mxu0 %v811_v11  ;;  %v825_v29 = vpack.c.bf16 %v222_v27, %v220_v26  ;;  %v226_v33 = vld [vmem:[#allocation7 + $0x98] sm:$0xff]  ;;  %v827_v34 = vpack.c.bf16 %v221_v31, %v219_v30  ;;  %v223_v36 = vld [vmem:[#allocation7 + $0x80] sm:$0xff]  ;;  %v225_v37 = vld [vmem:[#allocation7 + $0x90] sm:$0xff]  ;;  %p1119_p10 = pnand %p1118_p9, %p1112_p6 }
  0x76   :  { %v829_v35 = vpack.c.bf16 %v226_v33, %v224_v32  ;;  %v228_v38 = vld [vmem:[#allocation7 + $0xa8] sm:$0xff]  ;;  %v230_v39 = vld [vmem:[#allocation7 + $0xb8] sm:$0xff]  ;;  %v831_v40 = vpack.c.bf16 %v225_v37, %v223_v36  ;;  %v227_v42 = vld [vmem:[#allocation7 + $0xa0] sm:$0xff] }
  0x77   :  { %820 = vmatpush1.bf16.msra.mxu1 %v819_v21  ;;  %v833_v41 = vpack.c.bf16 %v230_v39, %v228_v38  ;;  %v229_v43 = vld [vmem:[#allocation7 + $0xb0] sm:$0xff]  ;;  %v232_v44 = vld [vmem:[#allocation7 + $0xc8] sm:$0xff]  ;;  %v234_v45 = vld [vmem:[#allocation7 + $0xd8] sm:$0xff] }
  0x78   :  { %770 = vmatmul.mubr.msk.f32.vlgmr.msra.gmra.mrb[0].mxu0 %vm131_vm1, %v119_v22  ;;  %822 = vmatprep.subr.bf16.mxu1 %v821_v23  ;;  %v835_v46 = vpack.c.bf16 %v229_v43, %v227_v42  ;;  %v837_v47 = vpack.c.bf16 %v234_v45, %v232_v44  ;;  %v231_v48 = vld [vmem:[#allocation7 + $0xc0] sm:$0xff]  ;;  %v233_v49 = vld [vmem:[#allocation7 + $0xd0] sm:$0xff]  ;;  %v236_v51 = vld [vmem:[#allocation7 + $0xe8] sm:$0xff] }
  0x79   :  { %v839_v50 = vpack.c.bf16 %v233_v49, %v231_v48  ;;  %v238_v52 = vld [vmem:[#allocation7 + $0xf8] sm:$0xff]  ;;  %v235_v54 = vld [vmem:[#allocation7 + $0xe0] sm:$0xff]  ;;  %v237_v55 = vld [vmem:[#allocation7 + $0xf0] sm:$0xff] }
  0x7a   :  { %v841_v53 = vpack.c.bf16 %v238_v52, %v236_v51  ;;  %v843_v56 = vpack.c.bf16 %v237_v55, %v235_v54  ;;  %v327_v57 = vld [vmem:[#allocation8 + $0x8] sm:$0xff]  ;;  %v329_v58 = vld [vmem:[#allocation8 + $0x18] sm:$0xff]  ;;  %v326_v59 = vld [vmem:[#allocation8] sm:$0xff] }
  0x7b   :  { %824 = vmatpush1.bf16.msra.mxu1 %v823_v28  ;;  %v845_v60 = vpack.c.bf16 %v329_v58, %v327_v57  ;;  %v328_v61 = vld [vmem:[#allocation8 + $0x10] sm:$0xff]  ;;  %v331_v62 = vld [vmem:[#allocation8 + $0x28] sm:$0xff]  ;;  %v333_v63 = vld [vmem:[#allocation8 + $0x38] sm:$0xff] }
  0x7c   :  { %826 = vmatprep.subr.bf16.mxu1 %v825_v29  ;;  %v847_v2 = vpack.c.bf16 %v328_v61, %v326_v59  ;;  %v849_v3 = vpack.c.bf16 %v333_v63, %v331_v62  ;;  %v330_v4 = vld [vmem:[#allocation8 + $0x20] sm:$0xff]  ;;  %v332_v5 = vld [vmem:[#allocation8 + $0x30] sm:$0xff]  ;;  %v335_v6 = vld [vmem:[#allocation8 + $0x48] sm:$0xff] }
  0x7d   :  { %846 = vmatprep.subr.bf16.mxu0 %v845_v60  ;;  %v337_v7 = vld [vmem:[#allocation8 + $0x58] sm:$0xff]  ;;  %v851_v8 = vpack.c.bf16 %v332_v5, %v330_v4  ;;  %v334_v10 = vld [vmem:[#allocation8 + $0x40] sm:$0xff]  ;;  %v336_v11 = vld [vmem:[#allocation8 + $0x50] sm:$0xff] }
  0x7e   :  { %848 = vmatpush1.bf16.msra.mxu0 %v847_v2  ;;  %v853_v9 = vpack.c.bf16 %v337_v7, %v335_v6  ;;  %v339_v12 = vld [vmem:[#allocation8 + $0x68] sm:$0xff]  ;;  %v341_v13 = vld [vmem:[#allocation8 + $0x78] sm:$0xff]  ;;  %v855_v14 = vpack.c.bf16 %v336_v11, %v334_v10  ;;  %v338_v16 = vld [vmem:[#allocation8 + $0x60] sm:$0xff] }
  0x7f   :  { %828 = vmatpush1.bf16.msra.mxu1 %v827_v34  ;;  %850 = vmatprep.subr.bf16.mxu0 %v849_v3  ;;  %v857_v15 = vpack.c.bf16 %v341_v13, %v339_v12  ;;  %v340_v17 = vld [vmem:[#allocation8 + $0x70] sm:$0xff]  ;;  %v343_v18 = vld [vmem:[#allocation8 + $0x88] sm:$0xff]  ;;  %v345_v19 = vld [vmem:[#allocation8 + $0x98] sm:$0xff] }
  0x80   :  { %830 = vmatprep.subr.bf16.mxu1 %v829_v35  ;;  %v859_v20 = vpack.c.bf16 %v340_v17, %v338_v16  ;;  %v861_v21 = vpack.c.bf16 %v345_v19, %v343_v18  ;;  %v342_v22 = vld [vmem:[#allocation8 + $0x80] sm:$0xff]  ;;  %v344_v23 = vld [vmem:[#allocation8 + $0x90] sm:$0xff]  ;;  %v347_v24 = vld [vmem:[#allocation8 + $0xa8] sm:$0xff] }
  0x81   :  { %v349_v25 = vld [vmem:[#allocation8 + $0xb8] sm:$0xff]  ;;  %v863_v26 = vpack.c.bf16 %v344_v23, %v342_v22  ;;  %v346_v28 = vld [vmem:[#allocation8 + $0xa0] sm:$0xff]  ;;  %v348_v29 = vld [vmem:[#allocation8 + $0xb0] sm:$0xff] }
  0x82   :  { %852 = vmatpush1.bf16.msra.mxu0 %v851_v8  ;;  %v865_v27 = vpack.c.bf16 %v349_v25, %v347_v24  ;;  %v351_v30 = vld [vmem:[#allocation8 + $0xc8] sm:$0xff]  ;;  %v353_v31 = vld [vmem:[#allocation8 + $0xd8] sm:$0xff]  ;;  %v867_v32 = vpack.c.bf16 %v348_v29, %v346_v28  ;;  %v350_v34 = vld [vmem:[#allocation8 + $0xc0] sm:$0xff] }
  0x83   :  { %832 = vmatpush1.bf16.msra.mxu1 %v831_v40  ;;  %854 = vmatprep.subr.bf16.mxu0 %v853_v9  ;;  %v869_v33 = vpack.c.bf16 %v353_v31, %v351_v30  ;;  %v352_v35 = vld [vmem:[#allocation8 + $0xd0] sm:$0xff]  ;;  %v355_v36 = vld [vmem:[#allocation8 + $0xe8] sm:$0xff]  ;;  %v357_v37 = vld [vmem:[#allocation8 + $0xf8] sm:$0xff] }
  0x84   :  { %834 = vmatprep.subr.bf16.mxu1 %v833_v41  ;;  %v871_v38 = vpack.c.bf16 %v352_v35, %v350_v34  ;;  %v873_v39 = vpack.c.bf16 %v357_v37, %v355_v36  ;;  %v354_v40 = vld [vmem:[#allocation8 + $0xe0] sm:$0xff]  ;;  %v356_v41 = vld [vmem:[#allocation8 + $0xf0] sm:$0xff]  ;;  %v359_v42 = vld [vmem:[#allocation8 + $0x108] sm:$0xff] }
  0x85   :  { %v361_v43 = vld [vmem:[#allocation8 + $0x118] sm:$0xff]  ;;  %v875_v44 = vpack.c.bf16 %v356_v41, %v354_v40  ;;  %v363_v48 = vld [vmem:[#allocation8 + $0x128] sm:$0xff]  ;;  %v362_v52 = vld [vmem:[#allocation8 + $0x120] sm:$0xff] }
  0x86   :  { %856 = vmatpush1.bf16.msra.mxu0 %v855_v14  ;;  %v877_v45 = vpack.c.bf16 %v361_v43, %v359_v42  ;;  %v365_v49 = vld [vmem:[#allocation8 + $0x138] sm:$0xff]  ;;  %v367_v54 = vld [vmem:[#allocation8 + $0x148] sm:$0xff]  ;;  %v366_v58 = vld [vmem:[#allocation8 + $0x140] sm:$0xff] }
  0x87   :  { %836 = vmatpush1.bf16.msra.mxu1 %v835_v46  ;;  %858 = vmatprep.subr.bf16.mxu0 %v857_v15  ;;  %v358_v46 = vld [vmem:[#allocation8 + $0x100] sm:$0xff]  ;;  %v881_v51 = vpack.c.bf16 %v365_v49, %v363_v48  ;;  %v369_v55 = vld [vmem:[#allocation8 + $0x158] sm:$0xff]  ;;  %v368_v59 = vld [vmem:[#allocation8 + $0x150] sm:$0xff] }
  0x88   :  { %838 = vmatprep.subr.bf16.mxu1 %v837_v47  ;;  %v360_v47 = vld [vmem:[#allocation8 + $0x110] sm:$0xff]  ;;  %v885_v57 = vpack.c.bf16 %v369_v55, %v367_v54  ;;  %v371_v60 = vld [vmem:[#allocation8 + $0x168] sm:$0xff]  ;;  %v373_v61 = vld [vmem:[#allocation8 + $0x178] sm:$0xff]  ;;  %v887_v62 = vpack.c.bf16 %v368_v59, %v366_v58 }
  0x89   :  { %v889_v63 = vpack.c.bf16 %v373_v61, %v371_v60  ;;  %v370_v2 = vld [vmem:[#allocation8 + $0x160] sm:$0xff]  ;;  %v372_v3 = vld [vmem:[#allocation8 + $0x170] sm:$0xff]  ;;  %v375_v4 = vld [vmem:[#allocation8 + $0x188] sm:$0xff] }
  0x8a   :  { %860 = vmatpush1.bf16.msra.mxu0 %v859_v20  ;;  %v377_v5 = vld [vmem:[#allocation8 + $0x198] sm:$0xff]  ;;  %v891_v6 = vpack.c.bf16 %v372_v3, %v370_v2  ;;  %v374_v8 = vld [vmem:[#allocation8 + $0x180] sm:$0xff]  ;;  %v376_v9 = vld [vmem:[#allocation8 + $0x190] sm:$0xff] }
  0x8b   :  { %840 = vmatpush1.bf16.msra.mxu1 %v839_v50  ;;  %862 = vmatprep.subr.bf16.mxu0 %v861_v21  ;;  %v879_v50 = vpack.c.bf16 %v360_v47, %v358_v46  ;;  %v893_v7 = vpack.c.bf16 %v377_v5, %v375_v4  ;;  %v379_v10 = vld [vmem:[#allocation8 + $0x1a8] sm:$0xff]  ;;  %v381_v11 = vld [vmem:[#allocation8 + $0x1b8] sm:$0xff]  ;;  %v895_v12 = vpack.c.bf16 %v376_v9, %v374_v8  ;;  %v378_v14 = vld [vmem:[#allocation8 + $0x1a0] sm:$0xff]  ;;  %v241_v9 = vlaneseq }
  0x8c   :  { %842 = vmatprep.subr.bf16.mxu1 %v841_v53  ;;  %v364_v53 = vld [vmem:[#allocation8 + $0x130] sm:$0xff]  ;;  %v897_v13 = vpack.c.bf16 %v381_v11, %v379_v10  ;;  %v700_v17 = vld [vmem:[%s1348_s2] ss:$0 sm:$0xff]  ;;  %v383_v23 = vld [vmem:[#allocation8 + $0x1c8] sm:$0xff] }
  0x8d   :  { %v380_v15 = vld [vmem:[#allocation8 + $0x1b0] sm:$0xff]  ;;  %v385_v24 = vld [vmem:[#allocation8 + $0x1d8] sm:$0xff]  ;;  %v387_v29 = vld [vmem:[#allocation8 + $0x1e8] sm:$0xff]  ;;  %v242_v10 = vshrl.u32 %v241_v9, 7 }
  0x8e   :  { %864 = vmatpush1.bf16.msra.mxu0 %v863_v26  ;;  %v899_v16 = vpack.c.bf16 %v380_v15, %v378_v14  ;;  %v901_v25 = vpack.c.bf16 %v385_v24, %v383_v23  ;;  %v382_v26 = vld [vmem:[#allocation8 + $0x1c0] sm:$0xff]  ;;  %v389_v30 = vld [vmem:[#allocation8 + $0x1f8] sm:$0xff]  ;;  %v494_v36 = vld [vmem:[#allocation10 + $0x88] sm:$0xff] }
  0x8f   :  { %844 = vmatpush1.bf16.msra.mxu1 %v843_v56  ;;  %866 = vmatprep.subr.bf16.mxu0 %v865_v27  ;;  %v883_v56 = vpack.c.bf16 %v364_v53, %v362_v52  ;;  %v384_v27 = vld [vmem:[#allocation8 + $0x1d0] sm:$0xff]  ;;  %v905_v31 = vpack.c.bf16 %v389_v30, %v387_v29  ;;  %v493_v35 = vld [vmem:[#allocation10 + $0x80] sm:$0xff]  ;;  %v496_v41 = vld [vmem:[#allocation10 + $0x98] sm:$0xff]  ;;  %v243_v11 = vsub.s32 0, %v242_v10 }
  0x90   :  { %v903_v28 = vpack.c.bf16 %v384_v27, %v382_v26  ;;  %v477_v37 = vld [vmem:[#allocation10] sm:$0xff]  ;;  %v495_v40 = vld [vmem:[#allocation10 + $0x90] sm:$0xff]  ;;  %v498_v47 = vld [vmem:[#allocation10 + $0xa8] sm:$0xff] }
  0x91   :  { %v913_v43 = vpack.c.bf16 %v496_v41, %v495_v40  ;;  %v497_v46 = vld [vmem:[#allocation10 + $0xa0] sm:$0xff]  ;;  %v499_v52 = vld [vmem:[#allocation10 + $0xb0] sm:$0xff]  ;;  %v500_v53 = vld [vmem:[#allocation10 + $0xb8] sm:$0xff] }
  0x92   :  { %868 = vmatpush1.bf16.msra.mxu0 %v867_v32  ;;  %v386_v32 = vld [vmem:[#allocation8 + $0x1e0] sm:$0xff]  ;;  %v917_v49 = vpack.c.bf16 %v498_v47, %v497_v46  ;;  %v921_v55 = vpack.c.bf16 %v500_v53, %v499_v52  ;;  %v502_v59 = vld [vmem:[#allocation10 + $0xc8] sm:$0xff]  ;;  %v503_v2 = vld [vmem:[#allocation10 + $0xd0] sm:$0xff] }
  0x93   :  { %870 = vmatprep.subr.bf16.mxu0 %v869_v33  ;;  %v388_v33 = vld [vmem:[#allocation8 + $0x1f0] sm:$0xff]  ;;  %v501_v58 = vld [vmem:[#allocation10 + $0xc0] sm:$0xff]  ;;  %v504_v3 = vld [vmem:[#allocation10 + $0xd8] sm:$0xff] }
  0x94   :  { %v907_v34 = vpack.c.bf16 %v388_v33, %v386_v32  ;;  %v925_v61 = vpack.c.bf16 %v502_v59, %v501_v58  ;;  %v929_v5 = vpack.c.bf16 %v504_v3, %v503_v2  ;;  %v505_v24 = vld [vmem:[#allocation10 + $0xe0] sm:$0xff]  ;;  %v507_v30 = vld [vmem:[#allocation10 + $0xf0] sm:$0xff]  ;;  %v601_v3 = vld [vmem:[#allocation11 + $0x68] sm:$0xff] }
  0x95   :  { %v489_v27 = vld [vmem:[#allocation10 + $0x60] sm:$0xff]  ;;  %v491_v33 = vld [vmem:[#allocation10 + $0x70] sm:$0xff]  ;;  %v702_v9 = vld [vmem:[%s1354_s8] ss:$0 sm:$0xff] }
  0x96   :  { %872 = vmatpush1.bf16.msra.mxu0 %v871_v38  ;;  %v909_v38 = vpack.c.bf16 %v494_v36, %v493_v35  ;;  %v390_v36 = vld [vmem:[%s1352_s6] sm:$0x3]  ;;  %v592_v53 = vld [vmem:[#allocation11 + $0x20] sm:$0xff] }
  0x97   :  { %874 = vmatprep.subr.bf16.mxu0 %v873_v39  ;;  %v478_v39 = vld [vmem:[#allocation10 + $0x8] sm:$0xff]  ;;  %v596_v59 = vld [vmem:[#allocation11 + $0x40] sm:$0xff] }
  0x98   :  { %v911_v42 = vpack.c.bf16 %v478_v39, %v477_v37  ;;  %910 = vmatprep.subr.bf16.mxu1 %v909_v38  ;;  %v395_v37 = vrot.slane %v390_v36, %v243_v11  ;;  %v600_v2 = vld [vmem:[#allocation11 + $0x60] sm:$0xff] }
  0x9a   :  { %876 = vmatpush1.bf16.msra.mxu0 %v875_v44  ;;  %v479_v44 = vld [vmem:[#allocation10 + $0x10] sm:$0xff] }
  0x9b   :  { %878 = vmatprep.subr.bf16.mxu0 %v877_v45  ;;  %v480_v45 = vld [vmem:[#allocation10 + $0x18] sm:$0xff] }
  0x9c   :  { %v915_v48 = vpack.c.bf16 %v480_v45, %v479_v44  ;;  %v588_v44 = vld [vmem:[#allocation11] sm:$0xff]  ;;  %v589_v45 = vld [vmem:[#allocation11 + $0x8] sm:$0xff] }
  0x9e   :  { %880 = vmatpush1.bf16.msra.mxu0 %v879_v50  ;;  %v481_v50 = vld [vmem:[#allocation10 + $0x20] sm:$0xff] }
  0x9f   :  { %882 = vmatprep.subr.bf16.mxu0 %v881_v51  ;;  %v482_v51 = vld [vmem:[#allocation10 + $0x28] sm:$0xff] }
  0xa0   :  { %v919_v54 = vpack.c.bf16 %v482_v51, %v481_v50  ;;  %v590_v50 = vld [vmem:[#allocation11 + $0x10] sm:$0xff]  ;;  %v591_v51 = vld [vmem:[#allocation11 + $0x18] sm:$0xff] }
  0xa1   :  { %v945_v52 = vpack.c.bf16 %v591_v51, %v590_v50 }
  0xa2   :  { %884 = vmatpush1.bf16.msra.mxu0 %v883_v56  ;;  %v483_v56 = vld [vmem:[#allocation10 + $0x30] sm:$0xff] }
  0xa3   :  { %886 = vmatprep.subr.bf16.mxu0 %v885_v57  ;;  %v484_v57 = vld [vmem:[#allocation10 + $0x38] sm:$0xff] }
  0xa4   :  { %v923_v60 = vpack.c.bf16 %v484_v57, %v483_v56  ;;  %v594_v56 = vld [vmem:[#allocation11 + $0x30] sm:$0xff]  ;;  %v595_v57 = vld [vmem:[#allocation11 + $0x38] sm:$0xff] }
  0xa5   :  { %v951_v58 = vpack.c.bf16 %v595_v57, %v594_v56 }
  0xa6   :  { %888 = vmatpush1.bf16.msra.mxu0 %v887_v62  ;;  %v485_v62 = vld [vmem:[#allocation10 + $0x40] sm:$0xff] }
  0xa7   :  { %890 = vmatprep.subr.bf16.mxu0 %v889_v63  ;;  %v486_v63 = vld [vmem:[#allocation10 + $0x48] sm:$0xff] }
  0xa8   :  { %v927_v4 = vpack.c.bf16 %v486_v63, %v485_v62  ;;  %v599_v62 = vld [vmem:[#allocation11 + $0x58] sm:$0xff] }
  0xaa   :  { %892 = vmatpush1.bf16.msra.mxu0 %v891_v6  ;;  %v487_v6 = vld [vmem:[#allocation10 + $0x50] sm:$0xff] }
  0xab   :  { %894 = vmatprep.subr.bf16.mxu0 %v893_v7  ;;  %v488_v7 = vld [vmem:[#allocation10 + $0x58] sm:$0xff] }
  0xac   :  { %v931_v8 = vpack.c.bf16 %v488_v7, %v487_v6  ;;  %v603_v6 = vld [vmem:[#allocation11 + $0x78] sm:$0xff] }
  0xae   :  { %896 = vmatpush1.bf16.msra.mxu0 %v895_v12  ;;  %v239_v12 = vld [vmem:[%s1350_s4] sm:$0x3] }
  0xaf   :  { %898 = vmatprep.subr.bf16.mxu0 %v897_v13  ;;  %v247_v13 = vsub.s32 1, %v242_v10  ;;  %v244_v14 = vrot.slane %v239_v12, %v243_v11 }
  0xb1   :  { %v248_v15 = vrot.slane %v239_v12, %v247_v13  ;;  %v399_v38 = vrot.slane %v390_v36, %v247_v13 }
  0xb2   :  { %900 = vmatpush1.bf16.msra.mxu0 %v899_v16 }
  0xb3   :  { %902 = vmatprep.subr.bf16.mxu0 %v901_v25  ;;  %v506_v25 = vld [vmem:[#allocation10 + $0xe8] sm:$0xff] }
  0xb4   :  { %v933_v26 = vpack.c.bf16 %v506_v25, %v505_v24 }
  0xb6   :  { %904 = vmatpush1.bf16.msra.mxu0 %v903_v28  ;;  %v490_v28 = vld [vmem:[#allocation10 + $0x68] sm:$0xff] }
  0xb7   :  { %906 = vmatprep.subr.bf16.mxu0 %v905_v31  ;;  %v935_v29 = vpack.c.bf16 %v490_v28, %v489_v27  ;;  %v508_v31 = vld [vmem:[#allocation10 + $0xf8] sm:$0xff] }
  0xb8   :  { %v937_v32 = vpack.c.bf16 %v508_v31, %v507_v30 }
  0xba   :  { %908 = vmatpush1.bf16.msra.mxu0 %v907_v34  ;;  %v492_v34 = vld [vmem:[#allocation10 + $0x78] sm:$0xff] }
  0xbb   :  { %v939_v35 = vpack.c.bf16 %v492_v34, %v491_v33 }
 0x14b   :  { %v201_v18 = vpop.f32.mrb[0].mxu0 }
 0x14c   :  { %v202_v19 = vadd.f32 %v700_v17, %v201_v18  ;;  %v771_v20 = vpop.f32.mrb[1].mxu0 }
 0x14e   :  { %v205_v21 = vmul.f32 0.01, %v202_v19 }
 0x150   :  { %v206_v22 = vmax.f32 %v202_v19, %v205_v21 }
 0x152   :  { %316 = vmatmul.mubr.f32.vlgmr.msra.gmra.mrb[0].mxu1 %v206_v22 }
 0x153   :  { %912 = vmatpush3.bf16.msra.mxu1 %v911_v42 }
 0x154   :  { %914 = vmatprep.subr.bf16.mxu1 %v913_v43 }
 0x157   :  { %916 = vmatpush3.bf16.msra.mxu1 %v915_v48  ;;  %v942_v48 = vpack.c.bf16 %v589_v45, %v588_v44 }
 0x158   :  { %918 = vmatprep.subr.bf16.mxu1 %v917_v49 }
 0x15b   :  { %920 = vmatpush3.bf16.msra.mxu1 %v919_v54  ;;  %v593_v54 = vld [vmem:[#allocation11 + $0x28] sm:$0xff] }
 0x15c   :  { %922 = vmatprep.subr.bf16.mxu1 %v921_v55  ;;  %v948_v55 = vpack.c.bf16 %v593_v54, %v592_v53 }
 0x15f   :  { %924 = vmatpush3.bf16.msra.mxu1 %v923_v60  ;;  %v597_v60 = vld [vmem:[#allocation11 + $0x48] sm:$0xff] }
 0x160   :  { %926 = vmatprep.subr.bf16.mxu1 %v925_v61  ;;  %v954_v61 = vpack.c.bf16 %v597_v60, %v596_v59 }
 0x163   :  { %928 = vmatpush3.bf16.msra.mxu1 %v927_v4  ;;  %v960_v4 = vpack.c.bf16 %v601_v3, %v600_v2 }
 0x164   :  { %930 = vmatprep.subr.bf16.mxu1 %v929_v5  ;;  %v602_v5 = vld [vmem:[#allocation11 + $0x70] sm:$0xff] }
 0x165   :  { %v963_v7 = vpack.c.bf16 %v603_v6, %v602_v5 }
 0x167   :  { %932 = vmatpush3.bf16.msra.mxu1 %v931_v8 }
 0x168   :  { %934 = vmatprep.subr.bf16.mxu1 %v933_v26 }
 0x16b   :  { %936 = vmatpush3.bf16.msra.mxu1 %v935_v29 }
 0x16c   :  { %938 = vmatprep.subr.bf16.mxu1 %v937_v32 }
 0x16f   :  { %940 = vmatpush3.bf16.msra.mxu1 %v939_v35 }
 0x170   :  { %941 = vmatprep.subr.bf16.mxu1 %v1153_v0 }
 0x225   :  { %v317_v16 = vpop.f32.mrb[0].mxu1 }
 0x226   :  { %v318_v17 = vadd.f32 %v317_v16, %v244_v14  ;;  %v319_v18 = vpop.f32.mrb[1].mxu1 }
 0x227   :  { %v320_v19 = vadd.f32 %v319_v18, %v248_v15  ;;  %v703_v15 = vld [vmem:[%s1356_s10] ss:$0 sm:$0xff] }
 0x228   :  { %v322_v20 = vmul.f32 0.01, %v318_v17 }
 0x229   :  { %v323_v21 = vmul.f32 0.01, %v320_v19 }
 0x22a   :  { %v324_v23 = vmax.f32 %v318_v17, %v322_v20 }
 0x22b   :  { %v325_v22 = vmax.f32 %v320_v19, %v323_v21 }
 0x22d   :  { %466 = vmatprep.mubr.f32.mxu0 %v325_v22 }
 0x22e   :  { %467 = vmatmul.mubr.f32.vlgmr.msra.gmra.mrb[2].mxu0 %v324_v23 }
 0x301   :  { %v468_v39 = vpop.f32.mrb[2].mxu0 }
 0x302   :  { %v469_v40 = vadd.f32 %v468_v39, %v395_v37  ;;  %v470_v41 = vpop.f32.mrb[3].mxu0 }
 0x303   :  { %v471_v42 = vadd.f32 %v470_v41, %v399_v38 }
 0x304   :  { %v473_v43 = vmul.f32 0.01, %v469_v40 }
 0x305   :  { %v474_v46 = vmul.f32 0.01, %v471_v42 }
 0x306   :  { %v475_v49 = vmax.f32 %v469_v40, %v473_v43 }
 0x307   :  { %v476_v47 = vmax.f32 %v471_v42, %v474_v46 }
 0x309   :  { %580 = vmatprep.mubr.f32.mxu1 %v476_v47 }
 0x30a   :  { %581 = vmatmul.mubr.f32.vlgmr.msra.gmra.mrb[2].mxu1 %v475_v49 }
 0x30b   :  { %943 = vmatpush3.bf16.msra.mxu1 %v942_v48  ;;  %804 = vmatprep.mubr.msk.f32.mxu1 %vm1154_vm0, %v1155_v1  ;;  %v598_v1 = vld [vmem:[#allocation11 + $0x50] sm:$0xff] }
 0x30c   :  { %944 = vmatprep.subr.bf16.mxu1 %v1153_v0  ;;  %v957_v63 = vpack.c.bf16 %v599_v62, %v598_v1 }
 0x30f   :  { %946 = vmatpush3.bf16.msra.mxu1 %v945_v52 }
 0x310   :  { %947 = vmatprep.subr.bf16.mxu1 %v1153_v0 }
 0x313   :  { %949 = vmatpush3.bf16.msra.mxu1 %v948_v55 }
 0x314   :  { %950 = vmatprep.subr.bf16.mxu1 %v1153_v0 }
 0x317   :  { %952 = vmatpush3.bf16.msra.mxu1 %v951_v58 }
 0x318   :  { %953 = vmatprep.subr.bf16.mxu1 %v1153_v0 }
 0x31b   :  { %955 = vmatpush3.bf16.msra.mxu1 %v954_v61 }
 0x31c   :  { %956 = vmatprep.subr.bf16.mxu1 %v1153_v0 }
 0x31f   :  { %958 = vmatpush3.bf16.msra.mxu1 %v957_v63 }
 0x320   :  { %959 = vmatprep.subr.bf16.mxu1 %v1153_v0 }
 0x323   :  { %961 = vmatpush3.bf16.msra.mxu1 %v960_v4 }
 0x324   :  { %962 = vmatprep.subr.bf16.mxu1 %v1153_v0 }
 0x327   :  { %964 = vmatpush3.bf16.msra.mxu1 %v963_v7 }
 0x3dd   :  { %v741_v8 = vpop.f32.mrb[2].mxu1 }
 0x3de   :  { %v742_v10 = vpop.f32.mrb[3].mxu1 }
 0x3df   :  { %v743_v11 = vadd.f32 %v742_v10, %v741_v8 }
 0x3e1   :  { %v583_v12 = vadd.f32 %v743_v11, %v702_v9 }
 0x3e3   :  { %v586_v13 = vmul.f32 0.01, %v583_v12 }
 0x3e5   :  { %v587_v14 = vmax.f32 %v583_v12, %v586_v13 }
 0x3e7   :  { %805 = vmatmul.mubr.f32.vlgmr.msra.gmra.mrb[4].mxu1 %v587_v14 }
 0x4ba   :  { %v677_v0 = vpop.f32.mrb[4].mxu1 }
 0x4bb   :  { %v678_v16 = vadd.f32 %v703_v15, %v677_v0  ;;  %v806_v17 = vpop.f32.mrb[5].mxu1 }
 0x4bd   :  { %681 = vst [vmem:[#allocation13] sm:$0xff] %v678_v16 }
 0x4be   :  { %1122 = shalt.err (!%p1119_p10)
}
 0x4bf   :  { %s1123_s3 = scalar_lea.hbm %s1357_s11, 128 }
 0x4c0   :  { %p1124_p11 = scmp.ne.s32.totalorder %s1357_s11, %s1123_s3  ;;  %p1127_p12 = scmp.lt.u32.totalorder %s1123_s3, %s1357_s11 }
 0x4c2   :  { %p1129_p13 = pnand %p1127_p12, %p1124_p11 }
 0x4c4   :  { %1132 = shalt.err (!%p1129_p13)
}
 0x4c5   :  { %691 = dma.vmem_to_hbm [thread:$0]  %s689_s23, 128, %s1357_s11, [#allocation4]  }
 0x4c6   :  { %1141 = dma.done.wait [#allocation4], 128  }
 0x4c7   :  { %1142 = vsyncadd [#allocation4], 4294967168 }
 0x4c8   :  { %695 = vsyncpa [#allocation3], 1 }
 0x4c9   :  { %696 = vsyncpa [#allocation6], 1 }
 0x4ca   :  { %697 = vsyncpa [#allocation9], 1 }
 0x4cb   :  { %698 = vsyncpa [#allocation12], 1 }
 0x4cc   :  { %699 = vsyncpa [#allocation4], 1 }

</bundles_post_ra>
